<compile_context>
chip_gen: v7x
topology: tpu7x:2x2x1
jax: 0.10.0
libtpu: 0.0.40
codegen_flags: <defaults>
</compile_context>

<pallas_src>
import functools

import jax
import jax.numpy as jnp
from jax.experimental import pallas as pl
from jax.experimental.pallas import tpu as pltpu


def _yolo_kernel(cxcy_ref, x_ref, out_ref, *, two_over_w, two_over_h,
                 num_classes, aw_scales, ah_scales, anchors_per_block,
                 anchor_axis_in_grid):
    """One grid step = one HW tile x `anchors_per_block` anchors, full batch.

    cxcy_ref : VMEM (2, T)                rows = [(gx-0.5)/W, (gy-0.5)/H]
    x_ref    : VMEM (B, A_blk, 5+NC, T)   raw network output (any float dtype)
    out_ref  : VMEM (B, A_blk, 4+NC, T)   rows = [x1, y1, x2, y2, conf*NC] f32
    """
    cx = cxcy_ref[0:1, :][None, None]                 # (1, 1, 1, T)
    cy = cxcy_ref[1:2, :][None, None]

    num_anchors = len(aw_scales)
    for a in range(anchors_per_block):
        # per-anchor (static config) 4*aw/W, 4*ah/H scales, splatted as scalars
        if anchor_axis_in_grid:
            idx = pl.program_id(1)                    # anchors_per_block == 1
            sw = jnp.float32(aw_scales[0])
            sh = jnp.float32(ah_scales[0])
            for j in range(1, num_anchors):
                sel = idx == j
                sw = jnp.where(sel, jnp.float32(aw_scales[j]), sw)
                sh = jnp.where(sel, jnp.float32(ah_scales[j]), sh)
        else:
            sw = jnp.float32(aw_scales[a])
            sh = jnp.float32(ah_scales[a])

        x = x_ref[:, a:a + 1, :, :].astype(jnp.float32)   # (B, 1, nch, T)
        s = jax.nn.sigmoid(x)
        # TODO(synk): on v7x, exp(-x) + pl.reciprocal(..., approx=True) trims
        # EUP pushes, but approx rcp error exceeds the 1e-5 check tolerance.

        # bx = (sig*2 - 0.5 + gx)/W  ==  sig*(2/W) + (gx - 0.5)/W
        bx = s[:, :, 0:1, :] * two_over_w + cx
        by = s[:, :, 1:2, :] * two_over_h + cy
        # bw = (sig*2)^2 * aw / W    ==  sig^2 * (4*aw/W)
        s2 = s[:, :, 2:3, :]
        s3 = s[:, :, 3:4, :]
        bw = s2 * s2 * sw
        bh = s3 * s3 * sh

        det = s[:, :, 4:5, :]                         # (B, 1, 1,  T)
        cls = s[:, :, 5:5 + num_classes, :]           # (B, 1, NC, T)

        bx1 = bx - bw * 0.5
        by1 = by - bh * 0.5

        # direct, lane-dense row-slice stores (no concat temp)
        out_ref[:, a:a + 1, 0:1, :] = bx1
        out_ref[:, a:a + 1, 1:2, :] = by1
        out_ref[:, a:a + 1, 2:3, :] = bx1 + bw
        out_ref[:, a:a + 1, 3:4, :] = by1 + bh
        out_ref[:, a:a + 1, 4:, :] = cls * det


def yolo_layer_forward(x, *, anchor_mask, num_classes, anchors, num_anchors,
                       stride):
    """JAX/Pallas equivalent of YoloLayer.forward (inference path).

    x: (B, len(anchor_mask)*(5+num_classes), H, W) float, NCHW.
    Returns (boxes, confs):
        boxes: (B, A*H*W, 1, 4)
        confs: (B, A*H*W, num_classes)
    """
    B, C, H, W = x.shape
    A = len(anchor_mask)
    anchor_step = len(anchors) // num_anchors
    nch = 5 + num_classes
    assert C == A * nch
    HW = H * W
    HW_ceil = ((HW + 127) // 128) * 128
    out_rows = 4 + num_classes   # exactly 8 sublanes when num_classes == 4

    # masked / stride-scaled anchors (host-side, static config)
    masked = []
    for m in anchor_mask:
        masked += anchors[m * anchor_step:(m + 1) * anchor_step]
    masked = [a / stride for a in masked]
    aw_scales = tuple(float(a) * 4.0 / float(W) for a in masked[0::2])
    ah_scales = tuple(float(a) * 4.0 / float(H) for a in masked[1::2])

    # per-position grid offsets, shared by all anchors (single (2, HW) stream)
    k = jnp.arange(HW, dtype=jnp.int32)
    cx = ((k % W).astype(jnp.float32) - 0.5) / float(W)
    cy = ((k // W).astype(jnp.float32) - 0.5) / float(H)
    cxcy = jnp.stack([cx, cy], axis=0)                # (2, HW)

    # contiguous reshape only -- no pad, no dtype cast
    x4 = x.reshape(B, A, nch, HW)
    x_item = jnp.dtype(x4.dtype).itemsize

    # ---- tile sizing -------------------------------------------------------
    # Tiny heads: fold all anchors into one block / one grid step.
    fold_bytes = B * A * (nch * x_item + out_rows * 4) * HW_ceil
    fold_anchors = (HW_ceil <= 2048) and (fold_bytes <= (2 << 20))
    a_blk = A if fold_anchors else 1

    # keep per-step working set (double buffers + temps) comfortably inside
    # the scoped-VMEM defaults (16/32 MiB on v5e / v6e+v7x)
    budget = 8 << 20
    per_lane = B * a_blk * (nch * x_item + out_rows * 4) * 4
    tile = max(128, min(2048, (budget // per_lane) // 128 * 128))
    tile_hw = min(tile, HW_ceil)                      # always a multiple of 128
    hw_tiles = pl.cdiv(HW, tile_hw)
    # TODO(synk): for very large B also tile the batch axis (per_lane above can
    # push tile_hw to its 128-lane floor).

    kern = functools.partial(
        _yolo_kernel,
        two_over_w=2.0 / float(W),
        two_over_h=2.0 / float(H),
        num_classes=num_classes,
        aw_scales=aw_scales,
        ah_scales=ah_scales,
        anchors_per_block=a_blk,
        anchor_axis_in_grid=not fold_anchors,
    )

    if fold_anchors:
        grid = (hw_tiles,)
        cxcy_spec = pl.BlockSpec((2, tile_hw), lambda h: (0, h))
        x_spec = pl.BlockSpec((B, A, nch, tile_hw), lambda h: (0, 0, 0, h))
        out_spec = pl.BlockSpec((B, A, out_rows, tile_hw),
                                lambda h: (0, 0, 0, h))
        dims = ("parallel",)
    else:
        grid = (hw_tiles, A)
        # cxcy block index repeats across the inner anchor axis -> Pallas skips
        # the redundant re-DMA of the grid offsets.
        cxcy_spec = pl.BlockSpec((2, tile_hw), lambda h, a: (0, h))
        x_spec = pl.BlockSpec((B, 1, nch, tile_hw), lambda h, a: (0, a, 0, h))
        out_spec = pl.BlockSpec((B, 1, out_rows, tile_hw),
                                lambda h, a: (0, a, 0, h))
        dims = ("parallel", "parallel")

    packed = pl.pallas_call(
        kern,
        out_shape=jax.ShapeDtypeStruct((B, A, out_rows, HW), jnp.float32),
        grid_spec=pltpu.PrefetchScalarGridSpec(
            num_scalar_prefetch=0,
            grid=grid,
            in_specs=[cxcy_spec, x_spec],
            out_specs=out_spec,
        ),
        compiler_params=pltpu.CompilerParams(dimension_semantics=dims),
    )(cxcy, x4)

    boxes4 = packed[:, :, :4, :]                      # (B, A, 4,  HW)
    confs4 = packed[:, :, 4:, :]                      # (B, A, NC, HW)

    # match torch ordering: flat index = a*H*W + h*W + w
    # TODO(synk): if the downstream consumer (NMS) can take channel-major,
    # skip these transposes entirely (~45% of total HBM traffic).
    boxes = jnp.transpose(boxes4, (0, 1, 3, 2)).reshape(B, A * HW, 1, 4)
    confs = jnp.transpose(confs4, (0, 1, 3, 2)).reshape(B, A * HW, num_classes)
    return boxes, confs


def _reference(x, masked_anchors, num_classes):
    """Pure-JAX reference mirroring yolo_forward_dynamic."""
    B, C, H, W = x.shape
    A = len(masked_anchors) // 2
    nch = 5 + num_classes
    xr = x.reshape(B, A, nch, H, W).astype(jnp.float32)
    s = jax.nn.sigmoid(xr)

    gx = jnp.arange(W, dtype=jnp.float32).reshape(1, 1, 1, W)
    gy = jnp.arange(H, dtype=jnp.float32).reshape(1, 1, H, 1)
    aw = jnp.asarray(masked_anchors[0::2], jnp.float32).reshape(1, A, 1, 1)
    ah = jnp.asarray(masked_anchors[1::2], jnp.float32).reshape(1, A, 1, 1)

    bx = (s[:, :, 0] * 2.0 - 0.5 + gx) / W
    by = (s[:, :, 1] * 2.0 - 0.5 + gy) / H
    bw = ((s[:, :, 2] * 2.0) ** 2) * aw / W
    bh = ((s[:, :, 3] * 2.0) ** 2) * ah / H
    det = s[:, :, 4].reshape(B, A * H * W, 1)
    cls = s[:, :, 5:]                                               # (B,A,NC,H,W)
    cls = jnp.transpose(cls.reshape(B, A, num_classes, H * W),
                        (0, 1, 3, 2)).reshape(B, A * H * W, num_classes)

    bx = bx.reshape(B, A * H * W, 1)
    by = by.reshape(B, A * H * W, 1)
    bw = bw.reshape(B, A * H * W, 1)
    bh = bh.reshape(B, A * H * W, 1)
    bx1 = bx - bw * 0.5
    by1 = by - bh * 0.5
    bx2 = bx1 + bw
    by2 = by1 + bh
    boxes = jnp.concatenate([bx1, by1, bx2, by2], axis=2).reshape(
        B, A * H * W, 1, 4)
    confs = cls * det
    return boxes, confs


if __name__ == "__main__":
    # YoloLayer config (synthetic but realistic small sizes)
    num_classes = 4
    anchor_mask = [0, 1, 2]
    anchors = [12, 16, 19, 36, 40, 28, 36, 75, 76, 55, 72, 146]
    num_anchors = 6
    stride = 32

    B, H, W = 2, 16, 16
    A = len(anchor_mask)
    C = A * (5 + num_classes)          # 27

    key = jax.random.PRNGKey(0)
    x = jax.random.normal(key, (B, C, H, W), dtype=jnp.float32)

    boxes, confs = yolo_layer_forward(
        x, anchor_mask=anchor_mask, num_classes=num_classes,
        anchors=anchors, num_anchors=num_anchors, stride=stride)
    jax.block_until_ready((boxes, confs))

    # correctness check against pure-JAX reference
    anchor_step = len(anchors) // num_anchors
    masked = []
    for m in anchor_mask:
        masked += anchors[m * anchor_step:(m + 1) * anchor_step]
    masked = [a / stride for a in masked]
    boxes_ref, confs_ref = _reference(x, masked, num_classes)

    assert boxes.shape == (B, A * H * W, 1, 4), boxes.shape
    assert confs.shape == (B, A * H * W, num_classes), confs.shape
    assert jnp.allclose(boxes, boxes_ref, atol=1e-5, rtol=1e-5)
    assert jnp.allclose(confs, confs_ref, atol=1e-5, rtol=1e-5)

    print("KERNEL_OK")
</pallas_src>

<mosaic_0001>
module attributes {stable_mosaic.version = 11 : i64} {
  func.func @_yolo_kernel(%arg0: i32, %arg1: memref<2x256xf32, #tpu.memory_space<vmem>>, %arg2: memref<2x3x9x256xf32, #tpu.memory_space<vmem>>, %arg3: memref<2x3x8x256xf32, #tpu.memory_space<vmem>>) attributes {dimension_semantics = [#tpu.dimension_semantics<parallel>], iteration_bounds = array<i64: 1>, scalar_prefetch = 0 : i64, scratch_operands = 0 : i64, tpu.core_type = #tpu.core_type<tc>, window_params = [{transform_indices = @transform_0, window_bounds = array<i64: 2, 256>}, {transform_indices = @transform_1, window_bounds = array<i64: 2, 3, 9, 256>}, {transform_indices = @transform_2, window_bounds = array<i64: 2, 3, 8, 256>}]} {
    %c0 = arith.constant 0 : index
    %c0_0 = arith.constant 0 : index
    %0 = vector.load %arg1[%c0, %c0_0] : memref<2x256xf32, #tpu.memory_space<vmem>>, vector<1x256xf32>
    %1 = vector.shape_cast %0 : vector<1x256xf32> to vector<1x1x1x256xf32>
    %c1 = arith.constant 1 : index
    %c0_1 = arith.constant 0 : index
    %2 = vector.load %arg1[%c1, %c0_1] : memref<2x256xf32, #tpu.memory_space<vmem>>, vector<1x256xf32>
    %3 = vector.shape_cast %2 : vector<1x256xf32> to vector<1x1x1x256xf32>
    %c0_2 = arith.constant 0 : index
    %c0_3 = arith.constant 0 : index
    %c0_4 = arith.constant 0 : index
    %c0_5 = arith.constant 0 : index
    %4 = vector.load %arg2[%c0_2, %c0_3, %c0_4, %c0_5] : memref<2x3x9x256xf32, #tpu.memory_space<vmem>>, vector<2x1x9x256xf32>
    %5 = arith.negf %4 : vector<2x1x9x256xf32>
    %6 = math.exp %5 : vector<2x1x9x256xf32>
    %cst = arith.constant 1.000000e+00 : f32
    %7 = vector.broadcast %cst : f32 to vector<2x1x9x256xf32>
    %8 = arith.addf %7, %6 : vector<2x1x9x256xf32>
    %9 = arith.divf %7, %8 : vector<2x1x9x256xf32>
    %10 = vector.extract_strided_slice %9 {offsets = [0, 0, 0, 0], sizes = [2, 1, 1, 256], strides = [1, 1, 1, 1]} : vector<2x1x9x256xf32> to vector<2x1x1x256xf32>
    %cst_6 = arith.constant 1.250000e-01 : f32
    %11 = vector.broadcast %cst_6 : f32 to vector<2x1x1x256xf32>
    %12 = arith.mulf %10, %11 : vector<2x1x1x256xf32>
    %13 = vector.broadcast %1 : vector<1x1x1x256xf32> to vector<2x1x1x256xf32>
    %14 = arith.addf %12, %13 : vector<2x1x1x256xf32>
    %15 = vector.extract_strided_slice %9 {offsets = [0, 0, 1, 0], sizes = [2, 1, 1, 256], strides = [1, 1, 1, 1]} : vector<2x1x9x256xf32> to vector<2x1x1x256xf32>
    %cst_7 = arith.constant 1.250000e-01 : f32
    %16 = vector.broadcast %cst_7 : f32 to vector<2x1x1x256xf32>
    %17 = arith.mulf %15, %16 : vector<2x1x1x256xf32>
    %18 = vector.broadcast %3 : vector<1x1x1x256xf32> to vector<2x1x1x256xf32>
    %19 = arith.addf %17, %18 : vector<2x1x1x256xf32>
    %20 = vector.extract_strided_slice %9 {offsets = [0, 0, 2, 0], sizes = [2, 1, 1, 256], strides = [1, 1, 1, 1]} : vector<2x1x9x256xf32> to vector<2x1x1x256xf32>
    %21 = vector.extract_strided_slice %9 {offsets = [0, 0, 3, 0], sizes = [2, 1, 1, 256], strides = [1, 1, 1, 1]} : vector<2x1x9x256xf32> to vector<2x1x1x256xf32>
    %22 = arith.mulf %20, %20 : vector<2x1x1x256xf32>
    %cst_8 = arith.constant 9.375000e-02 : f32
    %23 = vector.broadcast %cst_8 : f32 to vector<2x1x1x256xf32>
    %24 = arith.mulf %22, %23 : vector<2x1x1x256xf32>
    %25 = arith.mulf %21, %21 : vector<2x1x1x256xf32>
    %cst_9 = arith.constant 1.250000e-01 : f32
    %26 = vector.broadcast %cst_9 : f32 to vector<2x1x1x256xf32>
    %27 = arith.mulf %25, %26 : vector<2x1x1x256xf32>
    %28 = vector.extract_strided_slice %9 {offsets = [0, 0, 4, 0], sizes = [2, 1, 1, 256], strides = [1, 1, 1, 1]} : vector<2x1x9x256xf32> to vector<2x1x1x256xf32>
    %29 = vector.extract_strided_slice %9 {offsets = [0, 0, 5, 0], sizes = [2, 1, 4, 256], strides = [1, 1, 1, 1]} : vector<2x1x9x256xf32> to vector<2x1x4x256xf32>
    %cst_10 = arith.constant 5.000000e-01 : f32
    %30 = vector.broadcast %cst_10 : f32 to vector<2x1x1x256xf32>
    %31 = arith.mulf %24, %30 : vector<2x1x1x256xf32>
    %32 = arith.subf %14, %31 : vector<2x1x1x256xf32>
    %cst_11 = arith.constant 5.000000e-01 : f32
    %33 = vector.broadcast %cst_11 : f32 to vector<2x1x1x256xf32>
    %34 = arith.mulf %27, %33 : vector<2x1x1x256xf32>
    %35 = arith.subf %19, %34 : vector<2x1x1x256xf32>
    %c0_12 = arith.constant 0 : index
    %c0_13 = arith.constant 0 : index
    %c0_14 = arith.constant 0 : index
    %c0_15 = arith.constant 0 : index
    %36 = vector.load %arg3[%c0_12, %c0_13, %c0_14, %c0_15] : memref<2x3x8x256xf32, #tpu.memory_space<vmem>>, vector<2x1x1x256xf32>
    tpu.vector_store %arg3[%c0_12, %c0_13, %c0_14, %c0_15], %32 {strides = array<i32>} : memref<2x3x8x256xf32, #tpu.memory_space<vmem>>, vector<2x1x1x256xf32>,
    %c0_16 = arith.constant 0 : index
    %c0_17 = arith.constant 0 : index
    %c1_18 = arith.constant 1 : index
    %c0_19 = arith.constant 0 : index
    %37 = vector.load %arg3[%c0_16, %c0_17, %c1_18, %c0_19] : memref<2x3x8x256xf32, #tpu.memory_space<vmem>>, vector<2x1x1x256xf32>
    tpu.vector_store %arg3[%c0_16, %c0_17, %c1_18, %c0_19], %35 {strides = array<i32>} : memref<2x3x8x256xf32, #tpu.memory_space<vmem>>, vector<2x1x1x256xf32>,
    %38 = arith.addf %32, %24 : vector<2x1x1x256xf32>
    %c0_20 = arith.constant 0 : index
    %c0_21 = arith.constant 0 : index
    %c2 = arith.constant 2 : index
    %c0_22 = arith.constant 0 : index
    %39 = vector.load %arg3[%c0_20, %c0_21, %c2, %c0_22] : memref<2x3x8x256xf32, #tpu.memory_space<vmem>>, vector<2x1x1x256xf32>
    tpu.vector_store %arg3[%c0_20, %c0_21, %c2, %c0_22], %38 {strides = array<i32>} : memref<2x3x8x256xf32, #tpu.memory_space<vmem>>, vector<2x1x1x256xf32>,
    %40 = arith.addf %35, %27 : vector<2x1x1x256xf32>
    %c0_23 = arith.constant 0 : index
    %c0_24 = arith.constant 0 : index
    %c3 = arith.constant 3 : index
    %c0_25 = arith.constant 0 : index
    %41 = vector.load %arg3[%c0_23, %c0_24, %c3, %c0_25] : memref<2x3x8x256xf32, #tpu.memory_space<vmem>>, vector<2x1x1x256xf32>
    tpu.vector_store %arg3[%c0_23, %c0_24, %c3, %c0_25], %40 {strides = array<i32>} : memref<2x3x8x256xf32, #tpu.memory_space<vmem>>, vector<2x1x1x256xf32>,
    %42 = vector.broadcast %28 : vector<2x1x1x256xf32> to vector<2x1x4x256xf32>
    %43 = arith.mulf %29, %42 : vector<2x1x4x256xf32>
    %c0_26 = arith.constant 0 : index
    %c0_27 = arith.constant 0 : index
    %c4 = arith.constant 4 : index
    %c0_28 = arith.constant 0 : index
    %44 = vector.load %arg3[%c0_26, %c0_27, %c4, %c0_28] : memref<2x3x8x256xf32, #tpu.memory_space<vmem>>, vector<2x1x4x256xf32>
    tpu.vector_store %arg3[%c0_26, %c0_27, %c4, %c0_28], %43 {strides = array<i32>} : memref<2x3x8x256xf32, #tpu.memory_space<vmem>>, vector<2x1x4x256xf32>,
    %c0_29 = arith.constant 0 : index
    %c1_30 = arith.constant 1 : index
    %c0_31 = arith.constant 0 : index
    %c0_32 = arith.constant 0 : index
    %45 = vector.load %arg2[%c0_29, %c1_30, %c0_31, %c0_32] : memref<2x3x9x256xf32, #tpu.memory_space<vmem>>, vector<2x1x9x256xf32>
    %46 = arith.negf %45 : vector<2x1x9x256xf32>
    %47 = math.exp %46 : vector<2x1x9x256xf32>
    %cst_33 = arith.constant 1.000000e+00 : f32
    %48 = vector.broadcast %cst_33 : f32 to vector<2x1x9x256xf32>
    %49 = arith.addf %48, %47 : vector<2x1x9x256xf32>
    %50 = arith.divf %48, %49 : vector<2x1x9x256xf32>
    %51 = vector.extract_strided_slice %50 {offsets = [0, 0, 0, 0], sizes = [2, 1, 1, 256], strides = [1, 1, 1, 1]} : vector<2x1x9x256xf32> to vector<2x1x1x256xf32>
    %cst_34 = arith.constant 1.250000e-01 : f32
    %52 = vector.broadcast %cst_34 : f32 to vector<2x1x1x256xf32>
    %53 = arith.mulf %51, %52 : vector<2x1x1x256xf32>
    %54 = vector.broadcast %1 : vector<1x1x1x256xf32> to vector<2x1x1x256xf32>
    %55 = arith.addf %53, %54 : vector<2x1x1x256xf32>
    %56 = vector.extract_strided_slice %50 {offsets = [0, 0, 1, 0], sizes = [2, 1, 1, 256], strides = [1, 1, 1, 1]} : vector<2x1x9x256xf32> to vector<2x1x1x256xf32>
    %cst_35 = arith.constant 1.250000e-01 : f32
    %57 = vector.broadcast %cst_35 : f32 to vector<2x1x1x256xf32>
    %58 = arith.mulf %56, %57 : vector<2x1x1x256xf32>
    %59 = vector.broadcast %3 : vector<1x1x1x256xf32> to vector<2x1x1x256xf32>
    %60 = arith.addf %58, %59 : vector<2x1x1x256xf32>
    %61 = vector.extract_strided_slice %50 {offsets = [0, 0, 2, 0], sizes = [2, 1, 1, 256], strides = [1, 1, 1, 1]} : vector<2x1x9x256xf32> to vector<2x1x1x256xf32>
    %62 = vector.extract_strided_slice %50 {offsets = [0, 0, 3, 0], sizes = [2, 1, 1, 256], strides = [1, 1, 1, 1]} : vector<2x1x9x256xf32> to vector<2x1x1x256xf32>
    %63 = arith.mulf %61, %61 : vector<2x1x1x256xf32>
    %cst_36 = arith.constant 0.1484375 : f32
    %64 = vector.broadcast %cst_36 : f32 to vector<2x1x1x256xf32>
    %65 = arith.mulf %63, %64 : vector<2x1x1x256xf32>
    %66 = arith.mulf %62, %62 : vector<2x1x1x256xf32>
    %cst_37 = arith.constant 2.812500e-01 : f32
    %67 = vector.broadcast %cst_37 : f32 to vector<2x1x1x256xf32>
    %68 = arith.mulf %66, %67 : vector<2x1x1x256xf32>
    %69 = vector.extract_strided_slice %50 {offsets = [0, 0, 4, 0], sizes = [2, 1, 1, 256], strides = [1, 1, 1, 1]} : vector<2x1x9x256xf32> to vector<2x1x1x256xf32>
    %70 = vector.extract_strided_slice %50 {offsets = [0, 0, 5, 0], sizes = [2, 1, 4, 256], strides = [1, 1, 1, 1]} : vector<2x1x9x256xf32> to vector<2x1x4x256xf32>
    %cst_38 = arith.constant 5.000000e-01 : f32
    %71 = vector.broadcast %cst_38 : f32 to vector<2x1x1x256xf32>
    %72 = arith.mulf %65, %71 : vector<2x1x1x256xf32>
    %73 = arith.subf %55, %72 : vector<2x1x1x256xf32>
    %cst_39 = arith.constant 5.000000e-01 : f32
    %74 = vector.broadcast %cst_39 : f32 to vector<2x1x1x256xf32>
    %75 = arith.mulf %68, %74 : vector<2x1x1x256xf32>
    %76 = arith.subf %60, %75 : vector<2x1x1x256xf32>
    %c0_40 = arith.constant 0 : index
    %c1_41 = arith.constant 1 : index
    %c0_42 = arith.constant 0 : index
    %c0_43 = arith.constant 0 : index
    %77 = vector.load %arg3[%c0_40, %c1_41, %c0_42, %c0_43] : memref<2x3x8x256xf32, #tpu.memory_space<vmem>>, vector<2x1x1x256xf32>
    tpu.vector_store %arg3[%c0_40, %c1_41, %c0_42, %c0_43], %73 {strides = array<i32>} : memref<2x3x8x256xf32, #tpu.memory_space<vmem>>, vector<2x1x1x256xf32>,
    %c0_44 = arith.constant 0 : index
    %c1_45 = arith.constant 1 : index
    %c1_46 = arith.constant 1 : index
    %c0_47 = arith.constant 0 : index
    %78 = vector.load %arg3[%c0_44, %c1_45, %c1_46, %c0_47] : memref<2x3x8x256xf32, #tpu.memory_space<vmem>>, vector<2x1x1x256xf32>
    tpu.vector_store %arg3[%c0_44, %c1_45, %c1_46, %c0_47], %76 {strides = array<i32>} : memref<2x3x8x256xf32, #tpu.memory_space<vmem>>, vector<2x1x1x256xf32>,
    %79 = arith.addf %73, %65 : vector<2x1x1x256xf32>
    %c0_48 = arith.constant 0 : index
    %c1_49 = arith.constant 1 : index
    %c2_50 = arith.constant 2 : index
    %c0_51 = arith.constant 0 : index
    %80 = vector.load %arg3[%c0_48, %c1_49, %c2_50, %c0_51] : memref<2x3x8x256xf32, #tpu.memory_space<vmem>>, vector<2x1x1x256xf32>
    tpu.vector_store %arg3[%c0_48, %c1_49, %c2_50, %c0_51], %79 {strides = array<i32>} : memref<2x3x8x256xf32, #tpu.memory_space<vmem>>, vector<2x1x1x256xf32>,
    %81 = arith.addf %76, %68 : vector<2x1x1x256xf32>
    %c0_52 = arith.constant 0 : index
    %c1_53 = arith.constant 1 : index
    %c3_54 = arith.constant 3 : index
    %c0_55 = arith.constant 0 : index
    %82 = vector.load %arg3[%c0_52, %c1_53, %c3_54, %c0_55] : memref<2x3x8x256xf32, #tpu.memory_space<vmem>>, vector<2x1x1x256xf32>
    tpu.vector_store %arg3[%c0_52, %c1_53, %c3_54, %c0_55], %81 {strides = array<i32>} : memref<2x3x8x256xf32, #tpu.memory_space<vmem>>, vector<2x1x1x256xf32>,
    %83 = vector.broadcast %69 : vector<2x1x1x256xf32> to vector<2x1x4x256xf32>
    %84 = arith.mulf %70, %83 : vector<2x1x4x256xf32>
    %c0_56 = arith.constant 0 : index
    %c1_57 = arith.constant 1 : index
    %c4_58 = arith.constant 4 : index
    %c0_59 = arith.constant 0 : index
    %85 = vector.load %arg3[%c0_56, %c1_57, %c4_58, %c0_59] : memref<2x3x8x256xf32, #tpu.memory_space<vmem>>, vector<2x1x4x256xf32>
    tpu.vector_store %arg3[%c0_56, %c1_57, %c4_58, %c0_59], %84 {strides = array<i32>} : memref<2x3x8x256xf32, #tpu.memory_space<vmem>>, vector<2x1x4x256xf32>,
    %c0_60 = arith.constant 0 : index
    %c2_61 = arith.constant 2 : index
    %c0_62 = arith.constant 0 : index
    %c0_63 = arith.constant 0 : index
    %86 = vector.load %arg2[%c0_60, %c2_61, %c0_62, %c0_63] : memref<2x3x9x256xf32, #tpu.memory_space<vmem>>, vector<2x1x9x256xf32>
    %87 = arith.negf %86 : vector<2x1x9x256xf32>
    %88 = math.exp %87 : vector<2x1x9x256xf32>
    %cst_64 = arith.constant 1.000000e+00 : f32
    %89 = vector.broadcast %cst_64 : f32 to vector<2x1x9x256xf32>
    %90 = arith.addf %89, %88 : vector<2x1x9x256xf32>
    %91 = arith.divf %89, %90 : vector<2x1x9x256xf32>
    %92 = vector.extract_strided_slice %91 {offsets = [0, 0, 0, 0], sizes = [2, 1, 1, 256], strides = [1, 1, 1, 1]} : vector<2x1x9x256xf32> to vector<2x1x1x256xf32>
    %cst_65 = arith.constant 1.250000e-01 : f32
    %93 = vector.broadcast %cst_65 : f32 to vector<2x1x1x256xf32>
    %94 = arith.mulf %92, %93 : vector<2x1x1x256xf32>
    %95 = vector.broadcast %1 : vector<1x1x1x256xf32> to vector<2x1x1x256xf32>
    %96 = arith.addf %94, %95 : vector<2x1x1x256xf32>
    %97 = vector.extract_strided_slice %91 {offsets = [0, 0, 1, 0], sizes = [2, 1, 1, 256], strides = [1, 1, 1, 1]} : vector<2x1x9x256xf32> to vector<2x1x1x256xf32>
    %cst_66 = arith.constant 1.250000e-01 : f32
    %98 = vector.broadcast %cst_66 : f32 to vector<2x1x1x256xf32>
    %99 = arith.mulf %97, %98 : vector<2x1x1x256xf32>
    %100 = vector.broadcast %3 : vector<1x1x1x256xf32> to vector<2x1x1x256xf32>
    %101 = arith.addf %99, %100 : vector<2x1x1x256xf32>
    %102 = vector.extract_strided_slice %91 {offsets = [0, 0, 2, 0], sizes = [2, 1, 1, 256], strides = [1, 1, 1, 1]} : vector<2x1x9x256xf32> to vector<2x1x1x256xf32>
    %103 = vector.extract_strided_slice %91 {offsets = [0, 0, 3, 0], sizes = [2, 1, 1, 256], strides = [1, 1, 1, 1]} : vector<2x1x9x256xf32> to vector<2x1x1x256xf32>
    %104 = arith.mulf %102, %102 : vector<2x1x1x256xf32>
    %cst_67 = arith.constant 3.125000e-01 : f32
    %105 = vector.broadcast %cst_67 : f32 to vector<2x1x1x256xf32>
    %106 = arith.mulf %104, %105 : vector<2x1x1x256xf32>
    %107 = arith.mulf %103, %103 : vector<2x1x1x256xf32>
    %cst_68 = arith.constant 2.187500e-01 : f32
    %108 = vector.broadcast %cst_68 : f32 to vector<2x1x1x256xf32>
    %109 = arith.mulf %107, %108 : vector<2x1x1x256xf32>
    %110 = vector.extract_strided_slice %91 {offsets = [0, 0, 4, 0], sizes = [2, 1, 1, 256], strides = [1, 1, 1, 1]} : vector<2x1x9x256xf32> to vector<2x1x1x256xf32>
    %111 = vector.extract_strided_slice %91 {offsets = [0, 0, 5, 0], sizes = [2, 1, 4, 256], strides = [1, 1, 1, 1]} : vector<2x1x9x256xf32> to vector<2x1x4x256xf32>
    %cst_69 = arith.constant 5.000000e-01 : f32
    %112 = vector.broadcast %cst_69 : f32 to vector<2x1x1x256xf32>
    %113 = arith.mulf %106, %112 : vector<2x1x1x256xf32>
    %114 = arith.subf %96, %113 : vector<2x1x1x256xf32>
    %cst_70 = arith.constant 5.000000e-01 : f32
    %115 = vector.broadcast %cst_70 : f32 to vector<2x1x1x256xf32>
    %116 = arith.mulf %109, %115 : vector<2x1x1x256xf32>
    %117 = arith.subf %101, %116 : vector<2x1x1x256xf32>
    %c0_71 = arith.constant 0 : index
    %c2_72 = arith.constant 2 : index
    %c0_73 = arith.constant 0 : index
    %c0_74 = arith.constant 0 : index
    %118 = vector.load %arg3[%c0_71, %c2_72, %c0_73, %c0_74] : memref<2x3x8x256xf32, #tpu.memory_space<vmem>>, vector<2x1x1x256xf32>
    tpu.vector_store %arg3[%c0_71, %c2_72, %c0_73, %c0_74], %114 {strides = array<i32>} : memref<2x3x8x256xf32, #tpu.memory_space<vmem>>, vector<2x1x1x256xf32>,
    %c0_75 = arith.constant 0 : index
    %c2_76 = arith.constant 2 : index
    %c1_77 = arith.constant 1 : index
    %c0_78 = arith.constant 0 : index
    %119 = vector.load %arg3[%c0_75, %c2_76, %c1_77, %c0_78] : memref<2x3x8x256xf32, #tpu.memory_space<vmem>>, vector<2x1x1x256xf32>
    tpu.vector_store %arg3[%c0_75, %c2_76, %c1_77, %c0_78], %117 {strides = array<i32>} : memref<2x3x8x256xf32, #tpu.memory_space<vmem>>, vector<2x1x1x256xf32>,
    %120 = arith.addf %114, %106 : vector<2x1x1x256xf32>
    %c0_79 = arith.constant 0 : index
    %c2_80 = arith.constant 2 : index
    %c2_81 = arith.constant 2 : index
    %c0_82 = arith.constant 0 : index
    %121 = vector.load %arg3[%c0_79, %c2_80, %c2_81, %c0_82] : memref<2x3x8x256xf32, #tpu.memory_space<vmem>>, vector<2x1x1x256xf32>
    tpu.vector_store %arg3[%c0_79, %c2_80, %c2_81, %c0_82], %120 {strides = array<i32>} : memref<2x3x8x256xf32, #tpu.memory_space<vmem>>, vector<2x1x1x256xf32>,
    %122 = arith.addf %117, %109 : vector<2x1x1x256xf32>
    %c0_83 = arith.constant 0 : index
    %c2_84 = arith.constant 2 : index
    %c3_85 = arith.constant 3 : index
    %c0_86 = arith.constant 0 : index
    %123 = vector.load %arg3[%c0_83, %c2_84, %c3_85, %c0_86] : memref<2x3x8x256xf32, #tpu.memory_space<vmem>>, vector<2x1x1x256xf32>
    tpu.vector_store %arg3[%c0_83, %c2_84, %c3_85, %c0_86], %122 {strides = array<i32>} : memref<2x3x8x256xf32, #tpu.memory_space<vmem>>, vector<2x1x1x256xf32>,
    %124 = vector.broadcast %110 : vector<2x1x1x256xf32> to vector<2x1x4x256xf32>
    %125 = arith.mulf %111, %124 : vector<2x1x4x256xf32>
    %c0_87 = arith.constant 0 : index
    %c2_88 = arith.constant 2 : index
    %c4_89 = arith.constant 4 : index
    %c0_90 = arith.constant 0 : index
    %126 = vector.load %arg3[%c0_87, %c2_88, %c4_89, %c0_90] : memref<2x3x8x256xf32, #tpu.memory_space<vmem>>, vector<2x1x4x256xf32>
    tpu.vector_store %arg3[%c0_87, %c2_88, %c4_89, %c0_90], %125 {strides = array<i32>} : memref<2x3x8x256xf32, #tpu.memory_space<vmem>>, vector<2x1x4x256xf32>,
    return
  }
  func.func @transform_0(%arg0: i32) -> (i32, i32) {
    %c0_i32 = arith.constant 0 : i32
    %c0_i32_0 = arith.constant 0 : i32
    return %c0_i32, %arg0 : i32, i32
  }
  func.func @transform_1(%arg0: i32) -> (i32, i32, i32, i32) {
    %c0_i32 = arith.constant 0 : i32
    %c0_i32_0 = arith.constant 0 : i32
    %c0_i32_1 = arith.constant 0 : i32
    %c0_i32_2 = arith.constant 0 : i32
    return %c0_i32, %c0_i32_0, %c0_i32_1, %arg0 : i32, i32, i32, i32
  }
  func.func @transform_2(%arg0: i32) -> (i32, i32, i32, i32) {
    %c0_i32 = arith.constant 0 : i32
    %c0_i32_0 = arith.constant 0 : i32
    %c0_i32_1 = arith.constant 0 : i32
    %c0_i32_2 = arith.constant 0 : i32
    return %c0_i32, %c0_i32_0, %c0_i32_1, %arg0 : i32, i32, i32, i32
  }
}

</mosaic_0001>

<bundles_post_ra>
// kernel: tpu_custom_call.1
= control target key start
LH: loop header
LB: loop body
LE: loop exit
PB: predicated region body
PF: predicated region fallthrough
CT: control target
= control target key end

     0   :  { %v76_v24 = vlaneseq  ;;  %v1366_v33 = vmov 1966171168   ;;  %s1769_s0 = inlined_call_operand.vmem [shape: f32[2,256], index: 0, kind: input, shape index: {}]   ;;  %s1770_s1 = inlined_call_operand.vmem [shape: f32[2,3,9,256], index: 1, kind: input, shape index: {}]   ;;  %s1771_s2 = inlined_call_operand.hbm [shape: f32[2,3,8,256], index: 2, kind: output, shape index: {}]  }
   0x1   :  { %v15_v0 = vld [vmem:[%s1770_s1] sm:$0xff]  ;;  %v16_v1 = vld [vmem:[%s1770_s1 + $0x8] sm:$0xff]  ;;  %v17_v6 = vld [vmem:[%s1770_s1 + $0x10] sm:$0x1]  ;;  %v163_v34 = vunpack.c.l.s4 %v1366_v33 }
   0x2   :  { %v1202_v2 = vmul.f32 -1.442695, %v15_v0  ;;  %v1203_v3 = vmul.f32 -1.442695, %v16_v1  ;;  %v19_v4 = vld [vmem:[%s1770_s1 + $0x60] sm:$0xff]  ;;  %v20_v5 = vld [vmem:[%s1770_s1 + $0x68] sm:$0xff] }
   0x3   :  { %v1206_v7 = vmul.f32 -1.442695, %v19_v4  ;;  %v1207_v8 = vmul.f32 -1.442695, %v20_v5  ;;  %v1204_v9 = vmul.f32 -1.442695, %v17_v6 }
   0x4   :  { %1246 = vpow2.f32 %v1202_v2  ;;  %v18_v10 = vld [vmem:[%s1770_s1 + $0x18] sm:$0x1]  ;;  %v21_v11 = vld [vmem:[%s1770_s1 + $0x70] sm:$0x1]  ;;  %v1210_v12 = vld [vmem:[%s1770_s1 + $0x20] sm:$0xff]  ;;  %v77_v32 = vshrl.u32 %v76_v24, 7 }
   0x5   :  { %1248 = vpow2.f32 %v1203_v3  ;;  %v22_v13 = vld [vmem:[%s1770_s1 + $0x78] sm:$0x1]  ;;  %v1211_v14 = vld [vmem:[%s1770_s1 + $0x28] sm:$0xff]  ;;  %v1205_v15 = vmul.f32 -1.442695, %v18_v10  ;;  %v1214_v16 = vld [vmem:[%s1770_s1 + $0x80] sm:$0xff] }
   0x6   :  { %1250 = vpow2.f32 %v1206_v7  ;;  %v1215_v17 = vld [vmem:[%s1770_s1 + $0x88] sm:$0xff]  ;;  %v1208_v18 = vmul.f32 -1.442695, %v21_v11  ;;  %v1209_v19 = vmul.f32 -1.442695, %v22_v13 }
   0x7   :  { %1252 = vpow2.f32 %v1207_v8  ;;  %v1218_v20 = vmul.f32 -1.442695, %v1210_v12  ;;  %v1219_v21 = vmul.f32 -1.442695, %v1211_v14  ;;  %v1222_v22 = vmul.f32 -1.442695, %v1214_v16 }
   0x8   :  { %1254 = vpow2.f32 %v1204_v9  ;;  %v1223_v23 = vmul.f32 -1.442695, %v1215_v17  ;;  %v1212_v28 = vld [vmem:[%s1770_s1 + $0x30] sm:$0x1] }
   0x9   :  { %1256 = vpow2.f32 %v1205_v15  ;;  %v1220_v38 = vmul.f32 -1.442695, %v1212_v28 }
   0xa   :  { %1258 = vpow2.f32 %v1208_v18 }
   0xb   :  { %1260 = vpow2.f32 %v1209_v19 }
   0xc   :  { %1262 = vpow2.f32 %v1218_v20 }
   0xd   :  { %1264 = vpow2.f32 %v1219_v21 }
   0xe   :  { %v1247_v25 = vpop.eup %1246  ;;  %1266 = vpow2.f32 %v1222_v22 }
   0xf   :  { %v1249_v26 = vpop.eup %1248  ;;  %v47_v27 = vadd.f32 1.0, %v1247_v25  ;;  %1268 = vpow2.f32 %v1223_v23 }
  0x10   :  { %v1251_v29 = vpop.eup %1250  ;;  %v48_v30 = vadd.f32 1.0, %v1249_v26 }
  0x11   :  { %v1253_v31 = vpop.eup %1252  ;;  %1270 = vrcp.f32 %v47_v27  ;;  %v51_v35 = vadd.f32 1.0, %v1251_v29 }
  0x12   :  { %v1255_v36 = vpop.eup %1254  ;;  %1272 = vrcp.f32 %v48_v30  ;;  %v52_v37 = vadd.f32 1.0, %v1253_v31 }
  0x13   :  { %1274 = vrcp.f32 %v51_v35  ;;  %v49_v39 = vadd.f32 1.0, %v1255_v36 }
  0x14   :  { %7 = vsyncpa [#allocation3], 0  ;;  %v1257_v40 = vpop.eup %1256  ;;  %1276 = vrcp.f32 %v52_v37  ;;  %v12_v42 = vld [vmem:[%s1769_s0] ss:$2 sm:$0x3]  ;;  %v78_v43 = vsub.s32 0, %v77_v32  ;;  %v164_v44 = vunpack.c.0.s8 %v163_v34 }
  0x15   :  { %v1259_v41 = vpop.eup %1258  ;;  %1278 = vrcp.f32 %v49_v39  ;;  %v50_v45 = vadd.f32 1.0, %v1257_v40  ;;  %v82_v47 = vsub.s32 1, %v77_v32  ;;  %v1201_v48 = vld [vmem:[%s1769_s0 + $0x1] ss:$2 sm:$0x3]  ;;  %v1431_v51 = vsub.s32 4, %v77_v32 }
  0x16   :  { %v1261_v46 = vpop.eup %1260  ;;  %v53_v49 = vadd.f32 1.0, %v1259_v41  ;;  %1280 = vpow2.f32 %v1220_v38  ;;  %v1213_v53 = vld [vmem:[%s1770_s1 + $0x38] sm:$0x1]  ;;  %v1436_v55 = vrot.slane %v12_v42, %v78_v43  ;;  %v1216_v58 = vld [vmem:[%s1770_s1 + $0x90] sm:$0x1]  ;;  %v1446_v61 = vsub.s32 %v164_v44, %v77_v32 }
  0x17   :  { %v1263_v50 = vpop.eup %1262  ;;  %1282 = vrcp.f32 %v50_v45  ;;  %v54_v52 = vadd.f32 1.0, %v1261_v46  ;;  %v1438_v56 = vrot.slane %v12_v42, %v82_v47  ;;  %v1217_v59 = vld [vmem:[%s1770_s1 + $0x98] sm:$0x1]  ;;  %v1448_v62 = vrot.slane %v1201_v48, %v78_v43 }
  0x18   :  { %v1265_v54 = vpop.eup %1264  ;;  %1284 = vrcp.f32 %v53_v49  ;;  %v450_v57 = vadd.f32 1.0, %v1263_v50  ;;  %v1450_v1 = vrot.slane %v1201_v48, %v82_v47  ;;  %v1452_v3 = vmul.f32 -1.442695, %v1213_v53 }
  0x19   :  { %v1267_v60 = vpop.eup %1266  ;;  %1286 = vrcp.f32 %v54_v52  ;;  %v451_v63 = vadd.f32 1.0, %v1265_v54  ;;  %v1456_v6 = vmul.f32 -1.442695, %v1216_v58  ;;  %v1458_v7 = vmul.f32 -1.442695, %v1217_v59 }
  0x1a   :  { %v1269_v0 = vpop.eup %1268  ;;  %1288 = vrcp.f32 %v450_v57  ;;  %v454_v2 = vadd.f32 1.0, %v1267_v60  ;;  %vm1501_vm0 = vcmp.lt.s32.totalorder %v76_v24, 256  ;;  %vm396_vm1 = vcmask 1046528  }
  0x1b   :  { %v1454_v4 = vpop.eup %1270  ;;  %1290 = vrcp.f32 %v451_v63  ;;  %v455_v5 = vadd.f32 1.0, %v1269_v0 }
  0x1c   :  { %v1460_v8 = vpop.eup %1272  ;;  %v71_v9 = vmul.f32 0.125, %v1454_v4  ;;  %v105_v10 = vmul.f32 %v1454_v4, %v1454_v4  ;;  %v1467_v11 = vrot.slane %v1454_v4, %v1431_v51  ;;  %1292 = vrcp.f32 %v454_v2 }
  0x1d   :  { %v1469_v12 = vpop.eup %1274  ;;  %v72_v13 = vmul.f32 0.125, %v1460_v8  ;;  %v106_v14 = vmul.f32 %v1460_v8, %v1460_v8  ;;  %v1476_v15 = vrot.slane %v1460_v8, %v1431_v51  ;;  %1294 = vrcp.f32 %v455_v5 }
  0x1e   :  { %v1478_v16 = vpop.eup %1276  ;;  %v86_v17 = vadd.f32 %v1436_v55, %v71_v9  ;;  %v109_v18 = vmul.f32 0.09375, %v105_v10  ;;  %v73_v19 = vmul.f32 0.125, %v1469_v12  ;;  %v107_v20 = vmul.f32 %v1469_v12, %v1469_v12 }
  0x1f   :  { %v1484_v21 = vpop.eup %1278  ;;  %v87_v22 = vadd.f32 %v1438_v56, %v72_v13  ;;  %v110_v23 = vmul.f32 0.09375, %v106_v14  ;;  %v74_v25 = vmul.f32 0.125, %v1478_v16  ;;  %v108_v26 = vmul.f32 %v1478_v16, %v1478_v16 }
  0x20   :  { %v1490_v27 = vpop.eup %1280  ;;  %v117_v28 = vmul.f32 0.5, %v109_v18  ;;  %v88_v29 = vadd.f32 %v1436_v55, %v73_v19  ;;  %v111_v30 = vmul.f32 0.09375, %v107_v20  ;;  %v101_v31 = vadd.f32 %v1448_v62, %v71_v9 }
  0x21   :  { %v1494_v32 = vpop.eup %1282  ;;  %v118_v33 = vmul.f32 0.5, %v110_v23  ;;  %v89_v34 = vadd.f32 %v1438_v56, %v74_v25  ;;  %v112_v35 = vmul.f32 0.09375, %v108_v26  ;;  %v102_v36 = vadd.f32 %v1450_v1, %v72_v13 }
  0x22   :  { %v1498_v37 = vpop.eup %1284  ;;  %v125_v38 = vrot.slane %v117_v28, 2  ;;  %v119_v40 = vmul.f32 0.5, %v111_v30  ;;  %v113_v41 = vmul.f32 0.125, %v105_v10  ;;  %v114_v42 = vmul.f32 0.125, %v106_v14 }
  0x23   :  { %v1505_v43 = vpop.eup %1286  ;;  %v126_v44 = vrot.slane %v118_v33, 2  ;;  %v120_v45 = vmul.f32 0.5, %v112_v35  ;;  %v103_v46 = vadd.f32 %v1448_v62, %v73_v19  ;;  %v104_v47 = vadd.f32 %v1450_v1, %v74_v25 }
  0x24   :  { %v1509_v48 = vpop.eup %1288  ;;  %v133_v49 = vsub.f32 %v86_v17, %v125_v38  ;;  %v127_v50 = vrot.slane %v119_v40, 2  ;;  %v137_v52 = vmul.f32 0.5, %v113_v41  ;;  %v138_v24 = vmul.f32 0.5, %v114_v42 }
  0x25   :  { %v1511_v53 = vpop.eup %1290  ;;  %v134_v54 = vsub.f32 %v87_v22, %v126_v44  ;;  %v128_v57 = vrot.slane %v120_v45, 2  ;;  %v115_v58 = vmul.f32 0.125, %v107_v20  ;;  %v116_v59 = vmul.f32 0.125, %v108_v26 }
  0x26   :  { %v1513_v60 = vpop.eup %1292  ;;  %v135_v63 = vsub.f32 %v88_v29, %v127_v50  ;;  %v145_v0 = vrot.slane %v137_v52, 2  ;;  %v146_v2 = vrot.slane %v138_v24, 2  ;;  %v250_v5 = vrot.slane %v109_v18, 2 }
  0x27   :  { %v1515_v9 = vpop.eup %1294  ;;  %v161_v10 = vcombine.low %v133_v49, %v134_v54  ;;  %v136_v13 = vsub.f32 %v89_v34, %v128_v57  ;;  %v139_v14 = vmul.f32 0.5, %v115_v58  ;;  %v140_v17 = vmul.f32 0.5, %v116_v59 }
  0x28   :  { %v153_v19 = vsub.f32 %v101_v31, %v145_v0  ;;  %v154_v25 = vsub.f32 %v102_v36, %v146_v2  ;;  %v251_v28 = vrot.slane %v110_v23, 2  ;;  %v258_v33 = vadd.f32 %v250_v5, %v133_v49 }
  0x29   :  { %v168_v22 = vrot.slane %v161_v10, %v1446_v61  ;;  %v176_v20 = vcombine.low %v135_v63, %v136_v13  ;;  %v147_v26 = vrot.slane %v139_v14, 2  ;;  %v148_v38 = vrot.slane %v140_v17, 2 }
  0x2a   :  { %v206_v40 = vcombine.low %v153_v19, %v154_v25  ;;  %v259_v29 = vadd.f32 %v251_v28, %v134_v54  ;;  %v252_v44 = vrot.slane %v111_v30, 2  ;;  %v253_v45 = vrot.slane %v112_v35, 2 }
  0x2b   :  { %v175_v18 = vrot.slane %v168_v22, %v1446_v61  ;;  %v183_v50 = vrot.slane %v176_v20, %v1446_v61  ;;  %v155_v34 = vsub.f32 %v103_v46, %v147_v26  ;;  %v156_v52 = vsub.f32 %v104_v47, %v148_v38 }
  0x2c   :  { %v213_v31 = vrot.slane %v206_v40, %v1446_v61  ;;  %v266_v23 = vcombine.low %v258_v33, %v259_v29  ;;  %v260_v36 = vadd.f32 %v252_v44, %v135_v63  ;;  %v261_v49 = vadd.f32 %v253_v45, %v136_v13 }
  0x2d   :  { %197 = vst.msk [vmem:[#allocation2] ss:$8 sm:$0x3] %vm1501_vm0, %v175_v18  ;;  %v190_v24 = vrot.slane %v183_v50, %v1446_v61  ;;  %v222_v54 = vcombine.low %v155_v34, %v156_v52  ;;  %v308_v30 = vrot.slane %v113_v41, 2  ;;  %v309_v35 = vrot.slane %v114_v42, 2 }
  0x2e   :  { %v214_v57 = vcombine.high %v213_v31, %v213_v31  ;;  %v273_v0 = vrot.slane %v266_v23, %v1446_v61  ;;  %v281_v2 = vcombine.low %v260_v36, %v261_v49  ;;  %v310_v46 = vrot.slane %v115_v58, 2 }
  0x2f   :  { %200 = vst.msk [vmem:[#allocation2 + $0x30] ss:$8 sm:$0x3] %vm1501_vm0, %v190_v24  ;;  %v229_v47 = vrot.slane %v222_v54, %v1446_v61  ;;  %v316_v63 = vadd.f32 %v308_v30, %v153_v19  ;;  %v317_v5 = vadd.f32 %v309_v35, %v154_v25  ;;  %v311_v10 = vrot.slane %v116_v59, 2 }
  0x30   :  { %v221_v13 = vrot.slane %v214_v57, %v1446_v61  ;;  %v280_v14 = vrot.slane %v273_v0, %v1446_v61  ;;  %v288_v41 = vrot.slane %v281_v2, %v1446_v61  ;;  %v318_v42 = vadd.f32 %v310_v46, %v155_v34 }
  0x31   :  { %v230_v17 = vcombine.high %v229_v47, %v229_v47  ;;  %v324_v28 = vcombine.low %v316_v63, %v317_v5  ;;  %v319_v33 = vadd.f32 %v311_v10, %v156_v52  ;;  %v380_v58 = vmul.f32 %v1454_v4, %v1467_v11 }
  0x32   :  { %241 = vst.msk [vmem:[#allocation2 + $0x1] ss:$8 sm:$0x3] %vm1501_vm0, %v221_v13  ;;  %299 = vst.msk [vmem:[#allocation2 + $0x2] ss:$8 sm:$0x3] %vm1501_vm0, %v280_v14  ;;  %v295_v59 = vrot.slane %v288_v41, %v1446_v61  ;;  %v382_v19 = vmul.f32 %v1484_v21, %v1467_v11  ;;  %v381_v25 = vmul.f32 %v1460_v8, %v1476_v15  ;;  %1296 = vpow2.f32 %v1452_v3 }
  0x33   :  { %v383_v22 = vmul.f32 %v1494_v32, %v1476_v15  ;;  %v237_v20 = vrot.slane %v230_v17, %v1446_v61  ;;  %v331_v4 = vrot.slane %v324_v28, %v1446_v61  ;;  %v340_v26 = vcombine.low %v318_v42, %v319_v33 }
  0x34   :  { %v397_v38 = vrot.slane %v380_v58, 1  ;;  %302 = vst.msk [vmem:[#allocation2 + $0x32] ss:$8 sm:$0x3] %vm1501_vm0, %v295_v59  ;;  %v398_v40 = vrot.slane %v382_v19, 1  ;;  %v400_v29 = vrot.slane %v381_v25, 1  ;;  %v375_v11 = vrot.slane %v1469_v12, %v1431_v51 }
  0x35   :  { %v401_v44 = vrot.slane %v383_v22, 1  ;;  %244 = vst.msk [vmem:[#allocation2 + $0x31] ss:$8 sm:$0x3] %vm1501_vm0, %v237_v20  ;;  %v332_v8 = vcombine.high %v331_v4, %v331_v4  ;;  %v347_v15 = vrot.slane %v340_v26, %v1446_v61  ;;  %v379_v21 = vrot.slane %v1478_v16, %v1431_v51 }
  0x36   :  { %v474_v32 = vmul.f32 0.125, %v1509_v48  ;;  %v399_v45 = vsel %vm396_vm1, %v397_v38, %v398_v40  ;;  %v384_v50 = vmul.f32 %v1469_v12, %v375_v11  ;;  %v386_v34 = vmul.f32 %v1498_v37, %v375_v11 }
  0x37   :  { %v402_v18 = vsel %vm396_vm1, %v400_v29, %v401_v44  ;;  %v339_v52 = vrot.slane %v332_v8, %v1446_v61  ;;  %v348_v31 = vcombine.high %v347_v15, %v347_v15  ;;  %413 = vst [vmem:[#allocation2] sm:$0xf0] %v399_v45  ;;  %v385_v23 = vmul.f32 %v1478_v16, %v379_v21 }
  0x38   :  { %414 = vst [vmem:[#allocation2 + $0x8] sm:$0xf0] %v402_v18  ;;  %v387_v36 = vmul.f32 %v1505_v43, %v379_v21  ;;  %v403_v49 = vrot.slane %v384_v50, 1  ;;  %v404_v24 = vrot.slane %v386_v34, 1  ;;  %v475_v54 = vmul.f32 0.125, %v1511_v53 }
  0x39   :  { %v478_v30 = vadd.f32 %v474_v32, %v1436_v55  ;;  %359 = vst.msk [vmem:[#allocation2 + $0x3] ss:$8 sm:$0x3] %vm1501_vm0, %v339_v52  ;;  %v355_v12 = vrot.slane %v348_v31, %v1446_v61  ;;  %v406_v37 = vrot.slane %v385_v23, 1  ;;  %v486_v57 = vmul.f32 %v1509_v48, %v1509_v48 }
  0x3a   :  { %v407_v35 = vrot.slane %v387_v36, 1  ;;  %v405_v16 = vsel %vm396_vm1, %v403_v49, %v404_v24  ;;  %v479_v43 = vadd.f32 %v475_v54, %v1438_v56  ;;  %v487_v0 = vmul.f32 %v1511_v53, %v1511_v53 }
  0x3b   :  { %v476_v2 = vmul.f32 0.125, %v1513_v60  ;;  %362 = vst.msk [vmem:[#allocation2 + $0x33] ss:$8 sm:$0x3] %vm1501_vm0, %v355_v12  ;;  %415 = vst [vmem:[#allocation2 + $0x30] sm:$0xf0] %v405_v16  ;;  %v488_v5 = vmul.f32 %v1513_v60, %v1513_v60  ;;  %v489_v14 = vmul.f32 %v1515_v9, %v1515_v9  ;;  %v482_v41 = vadd.f32 %v474_v32, %v1448_v62 }
  0x3c   :  { %v408_v46 = vsel %vm396_vm1, %v406_v37, %v407_v35  ;;  %v490_v47 = vmul.f32 0.1484375, %v486_v57  ;;  %v477_v63 = vmul.f32 0.125, %v1515_v9  ;;  %v491_v10 = vmul.f32 0.1484375, %v487_v0 }
  0x3d   :  { %416 = vst [vmem:[#allocation2 + $0x38] sm:$0xf0] %v408_v46  ;;  %v480_v13 = vadd.f32 %v476_v2, %v1436_v55  ;;  %v492_v28 = vmul.f32 0.1484375, %v488_v5  ;;  %v483_v33 = vadd.f32 %v475_v54, %v1450_v1  ;;  %v493_v59 = vmul.f32 0.1484375, %v489_v14 }
  0x3e   :  { %v498_v42 = vmul.f32 0.5, %v490_v47  ;;  %v481_v17 = vadd.f32 %v477_v63, %v1438_v56  ;;  %v499_v58 = vmul.f32 0.5, %v491_v10  ;;  %v494_v19 = vmul.f32 0.28125, %v486_v57 }
  0x3f   :  { %v495_v25 = vmul.f32 0.28125, %v487_v0  ;;  %v500_v20 = vmul.f32 0.5, %v492_v28  ;;  %v484_v4 = vadd.f32 %v476_v2, %v1448_v62  ;;  %v485_v26 = vadd.f32 %v477_v63, %v1450_v1 }
  0x40   :  { %v506_v22 = vrot.slane %v498_v42, 2  ;;  %v507_v38 = vrot.slane %v499_v58, 2  ;;  %v501_v40 = vmul.f32 0.5, %v493_v59  ;;  %v518_v29 = vmul.f32 0.5, %v494_v19 }
  0x41   :  { %v519_v44 = vmul.f32 0.5, %v495_v25  ;;  %v508_v8 = vrot.slane %v500_v20, 2  ;;  %v496_v15 = vmul.f32 0.28125, %v488_v5  ;;  %v497_v21 = vmul.f32 0.28125, %v489_v14 }
  0x42   :  { %v514_v11 = vsub.f32 %v478_v30, %v506_v22  ;;  %v515_v32 = vsub.f32 %v479_v43, %v507_v38  ;;  %v509_v45 = vrot.slane %v501_v40, 2  ;;  %v526_v18 = vrot.slane %v518_v29, 2  ;;  %v1226_v40 = vld [vmem:[%s1770_s1 + $0x40] sm:$0xff] }
  0x43   :  { %v527_v50 = vrot.slane %v519_v44, 2  ;;  %v516_v34 = vsub.f32 %v480_v13, %v508_v8  ;;  %v520_v52 = vmul.f32 0.5, %v496_v15  ;;  %v521_v31 = vmul.f32 0.5, %v497_v21 }
  0x44   :  { %v628_v23 = vrot.slane %v490_v47, 2  ;;  %v542_v36 = vcombine.low %v514_v11, %v515_v32  ;;  %v517_v49 = vsub.f32 %v481_v17, %v509_v45  ;;  %v534_v24 = vsub.f32 %v482_v41, %v526_v18  ;;  %v1230_v18 = vld [vmem:[%s1770_s1 + $0xa0] sm:$0xff] }
  0x45   :  { %v535_v54 = vsub.f32 %v483_v33, %v527_v50  ;;  %v528_v12 = vrot.slane %v520_v52, 2  ;;  %v529_v37 = vrot.slane %v521_v31, 2  ;;  %v629_v35 = vrot.slane %v491_v10, 2  ;;  %v1231_v52 = vld [vmem:[%s1770_s1 + $0xa8] sm:$0xff] }
  0x46   :  { %v636_v57 = vadd.f32 %v628_v23, %v514_v11  ;;  %v549_v30 = vrot.slane %v542_v36, %v1446_v61  ;;  %v557_v16 = vcombine.low %v516_v34, %v517_v49  ;;  %v630_v43 = vrot.slane %v492_v28, 2 }
  0x47   :  { %v584_v0 = vcombine.low %v534_v24, %v535_v54  ;;  %v536_v2 = vsub.f32 %v484_v4, %v528_v12  ;;  %v537_v46 = vsub.f32 %v485_v26, %v529_v37  ;;  %v637_v63 = vadd.f32 %v629_v35, %v515_v32  ;;  %v1232_v35 = vld [vmem:[%s1770_s1 + $0xb0] sm:$0x1] }
  0x48   :  { %v631_v5 = vrot.slane %v493_v59, 2  ;;  %v556_v13 = vrot.slane %v549_v30, %v1446_v61  ;;  %v564_v47 = vrot.slane %v557_v16, %v1446_v61  ;;  %v638_v41 = vadd.f32 %v630_v43, %v516_v34  ;;  %v1233_v16 = vld [vmem:[%s1770_s1 + $0xb8] sm:$0x1] }
  0x49   :  { %v591_v14 = vrot.slane %v584_v0, %v1446_v61  ;;  %v600_v42 = vcombine.low %v536_v2, %v537_v46  ;;  %v644_v17 = vcombine.low %v636_v57, %v637_v63  ;;  %v686_v33 = vrot.slane %v494_v19, 2 }
  0x4a   :  { %v639_v10 = vadd.f32 %v631_v5, %v517_v49  ;;  %575 = vst.msk [vmem:[#allocation2 + $0x10] ss:$8 sm:$0x3] %vm1501_vm0, %v556_v13  ;;  %v571_v28 = vrot.slane %v564_v47, %v1446_v61  ;;  %v687_v22 = vrot.slane %v495_v25, 2  ;;  %v688_v20 = vrot.slane %v496_v15, 2  ;;  %v1227_v25 = vld [vmem:[%s1770_s1 + $0x48] sm:$0xff]  ;;  %v1297_v13 = vpop.eup %1296 }
  0x4b   :  { %v592_v58 = vcombine.high %v591_v14, %v591_v14  ;;  %v607_v59 = vrot.slane %v600_v42, %v1446_v61  ;;  %v651_v4 = vrot.slane %v644_v17, %v1446_v61  ;;  %v694_v38 = vadd.f32 %v686_v33, %v534_v24 }
  0x4c   :  { %v659_v26 = vcombine.low %v638_v41, %v639_v10  ;;  %578 = vst.msk [vmem:[#allocation2 + $0x40] ss:$8 sm:$0x3] %vm1501_vm0, %v571_v28  ;;  %v695_v29 = vadd.f32 %v687_v22, %v535_v54  ;;  %v689_v44 = vrot.slane %v497_v21, 2  ;;  %v696_v11 = vadd.f32 %v688_v20, %v536_v2  ;;  %v1229_v54 = vld [vmem:[%s1770_s1 + $0x58] sm:$0x1] }
  0x4d   :  { %v599_v19 = vrot.slane %v592_v58, %v1446_v61  ;;  %v608_v8 = vcombine.high %v607_v59, %v607_v59  ;;  %v658_v15 = vrot.slane %v651_v4, %v1446_v61  ;;  %v452_v45 = vadd.f32 1.0, %v1490_v27  ;;  %v1228_v27 = vld [vmem:[%s1770_s1 + $0x50] sm:$0x1]  ;;  %s1367_s1 = smov [#allocation2]  }
  0x4e   :  { %v666_v32 = vrot.slane %v659_v26, %v1446_v61  ;;  %v702_v21 = vcombine.low %v694_v38, %v695_v29  ;;  %v697_v50 = vadd.f32 %v689_v44, %v537_v46  ;;  %v1234_v34 = vmul.f32 -1.442695, %v1226_v40  ;;  %s1176_s4 = sshll.u32 %s1367_s1, 4  ;;  %s1177_s4 = int_to_ptr.vmem [resolvable:$true] %s1176_s4 }
  0x4f   :  { %619 = vst.msk [vmem:[#allocation2 + $0x11] ss:$8 sm:$0x3] %vm1501_vm0, %v599_v19  ;;  %v615_v31 = vrot.slane %v608_v8, %v1446_v61  ;;  %677 = vst.msk [vmem:[#allocation2 + $0x12] ss:$8 sm:$0x3] %vm1501_vm0, %v658_v15  ;;  %1298 = vrcp.f32 %v452_v45  ;;  %v745_v30 = vrot.slane %v1509_v48, %v1431_v51  ;;  %v749_v26 = vrot.slane %v1511_v53, %v1431_v51  ;;  %p1347_p1 = scmp.lt.s32.totalorder %s1177_s4, %s1177_s4 }
  0x50   :  { %v673_v23 = vrot.slane %v666_v32, %v1446_v61  ;;  %v1235_v36 = vmul.f32 -1.442695, %v1227_v25  ;;  %v709_v3 = vrot.slane %v702_v21, %v1446_v61  ;;  %v718_v49 = vcombine.low %v696_v11, %v697_v50  ;;  %s1342_s5 = scalar_lea.vmem %s1177_s4, 1536 }
  0x51   :  { %1300 = vpow2.f32 %v1456_v6  ;;  %v1238_v24 = vmul.f32 -1.442695, %v1230_v18  ;;  %622 = vst.msk [vmem:[#allocation2 + $0x41] ss:$8 sm:$0x3] %vm1501_vm0, %v615_v31  ;;  %v758_v5 = vmul.f32 %v1509_v48, %v745_v30  ;;  %v453_v14 = vadd.f32 1.0, %v1297_v13  ;;  %p1343_p0 = scmp.ne.s32.totalorder %s1177_s4, %s1342_s5  ;;  %p1348_p2 = scmp.lt.s32.totalorder %s1342_s5, %s1342_s5 }
  0x52   :  { %680 = vst.msk [vmem:[#allocation2 + $0x42] ss:$8 sm:$0x3] %vm1501_vm0, %v673_v23  ;;  %1302 = vpow2.f32 %v1458_v7  ;;  %v1239_v12 = vmul.f32 -1.442695, %v1231_v52  ;;  %v710_v6 = vcombine.high %v709_v3, %v709_v3  ;;  %v725_v57 = vrot.slane %v718_v49, %v1446_v61 }
  0x53   :  { %v1236_v37 = vmul.f32 -1.442695, %v1228_v27  ;;  %1304 = vpow2.f32 %v1234_v34  ;;  %v1237_v0 = vmul.f32 -1.442695, %v1229_v54  ;;  %v1240_v2 = vmul.f32 -1.442695, %v1232_v35  ;;  %p1349_p3 = por %p1348_p2, %p1347_p1 }
  0x54   :  { %1306 = vpow2.f32 %v1235_v36  ;;  %v717_v7 = vrot.slane %v710_v6, %v1446_v61  ;;  %v726_v43 = vcombine.high %v725_v57, %v725_v57  ;;  %v1241_v46 = vmul.f32 -1.442695, %v1233_v16 }
  0x55   :  { %1308 = vpow2.f32 %v1238_v24  ;;  %v774_v17 = vrot.slane %v758_v5, 1  ;;  %v753_v44 = vrot.slane %v1513_v60, %v1431_v51  ;;  %v757_v8 = vrot.slane %v1515_v9, %v1431_v51  ;;  %p1350_p4 = pnand %p1349_p3, %p1343_p0 }
  0x56   :  { %1310 = vpow2.f32 %v1239_v12  ;;  %737 = vst.msk [vmem:[#allocation2 + $0x13] ss:$8 sm:$0x3] %vm1501_vm0, %v717_v7  ;;  %v733_v63 = vrot.slane %v726_v43, %v1446_v61  ;;  %v759_v32 = vmul.f32 %v1511_v53, %v749_v26 }
  0x57   :  { %1312 = vpow2.f32 %v1236_v37  ;;  %v762_v50 = vmul.f32 %v1513_v60, %v753_v44  ;;  %v763_v27 = vmul.f32 %v1515_v9, %v757_v8 }
  0x58   :  { %1314 = vpow2.f32 %v1237_v0  ;;  %740 = vst.msk [vmem:[#allocation2 + $0x43] ss:$8 sm:$0x3] %vm1501_vm0, %v733_v63  ;;  %v777_v36 = vrot.slane %v759_v32, 1 }
  0x59   :  { %1316 = vpow2.f32 %v1240_v2  ;;  %v1299_v47 = vpop.eup %1298  ;;  %v780_v53 = vrot.slane %v762_v50, 1  ;;  %v783_v35 = vrot.slane %v763_v27, 1 }
  0x5a   :  { %1318 = vpow2.f32 %v1241_v46  ;;  %v760_v42 = vmul.f32 %v1299_v47, %v745_v30 }
  0x5b   :  { %v1301_v41 = vpop.eup %1300  ;;  %1320 = vrcp.f32 %v453_v14 }
  0x5c   :  { %v1303_v10 = vpop.eup %1302  ;;  %v456_v33 = vadd.f32 1.0, %v1301_v41  ;;  %v775_v58 = vrot.slane %v760_v42, 1 }
  0x5d   :  { %v1305_v28 = vpop.eup %1304  ;;  %v457_v22 = vadd.f32 1.0, %v1303_v10 }
  0x5e   :  { %v1307_v48 = vpop.eup %1306  ;;  %1322 = vrcp.f32 %v456_v33  ;;  %v827_v20 = vadd.f32 1.0, %v1305_v28  ;;  %v776_v4 = vsel %vm396_vm1, %v774_v17, %v775_v58 }
  0x5f   :  { %v1309_v59 = vpop.eup %1308  ;;  %1324 = vrcp.f32 %v457_v22  ;;  %v828_v38 = vadd.f32 1.0, %v1307_v48  ;;  %790 = vst [vmem:[#allocation2 + $0x10] sm:$0xf0] %v776_v4 }
  0x60   :  { %v1311_v40 = vpop.eup %1310  ;;  %1326 = vrcp.f32 %v827_v20  ;;  %v831_v19 = vadd.f32 1.0, %v1309_v59 }
  0x61   :  { %v1313_v29 = vpop.eup %1312  ;;  %1328 = vrcp.f32 %v828_v38  ;;  %v832_v11 = vadd.f32 1.0, %v1311_v40 }
  0x62   :  { %v1315_v25 = vpop.eup %1314  ;;  %1330 = vrcp.f32 %v831_v19  ;;  %v829_v45 = vadd.f32 1.0, %v1313_v29 }
  0x63   :  { %v1317_v15 = vpop.eup %1316  ;;  %1332 = vrcp.f32 %v832_v11  ;;  %v830_v21 = vadd.f32 1.0, %v1315_v25 }
  0x64   :  { %v1319_v18 = vpop.eup %1318  ;;  %v833_v34 = vadd.f32 1.0, %v1317_v15  ;;  %1334 = vrcp.f32 %v829_v45 }
  0x65   :  { %v1321_v52 = vpop.eup %1320  ;;  %v834_v31 = vadd.f32 1.0, %v1319_v18  ;;  %1336 = vrcp.f32 %v830_v21 }
  0x66   :  { %v761_v23 = vmul.f32 %v1321_v52, %v749_v26  ;;  %1338 = vrcp.f32 %v833_v34 }
  0x67   :  { %1340 = vrcp.f32 %v834_v31 }
  0x68   :  { %v1323_v3 = vpop.eup %1322  ;;  %v778_v24 = vrot.slane %v761_v23, 1 }
  0x69   :  { %v1325_v49 = vpop.eup %1324  ;;  %v764_v54 = vmul.f32 %v1323_v3, %v753_v44 }
  0x6a   :  { %v1662_v12 = vpop.eup %1326  ;;  %v765_v37 = vmul.f32 %v1325_v49, %v757_v8  ;;  %v779_v9 = vsel %vm396_vm1, %v777_v36, %v778_v24 }
  0x6b   :  { %v1664_v60 = vpop.eup %1328  ;;  %v781_v6 = vrot.slane %v764_v54, 1  ;;  %v851_v57 = vmul.f32 0.125, %v1662_v12  ;;  %v863_v30 = vmul.f32 %v1662_v12, %v1662_v12  ;;  %791 = vst [vmem:[#allocation2 + $0x18] sm:$0xf0] %v779_v9  ;;  %v1677_v2 = vrot.slane %v1662_v12, %v1431_v51 }
  0x6c   :  { %v1670_v16 = vpop.eup %1330  ;;  %v784_v0 = vrot.slane %v765_v37, 1  ;;  %v852_v7 = vmul.f32 0.125, %v1664_v60  ;;  %v864_v43 = vmul.f32 %v1664_v60, %v1664_v60 }
  0x6d   :  { %v1679_v46 = vpop.eup %1332  ;;  %v782_v63 = vsel %vm396_vm1, %v780_v53, %v781_v6  ;;  %v855_v5 = vadd.f32 %v851_v57, %v1436_v55  ;;  %v867_v13 = vmul.f32 0.3125, %v863_v30  ;;  %v853_v47 = vmul.f32 0.125, %v1670_v16 }
  0x6e   :  { %792 = vst [vmem:[#allocation2 + $0x40] sm:$0xf0] %v782_v63  ;;  %v785_v14 = vsel %vm396_vm1, %v783_v35, %v784_v0  ;;  %v856_v41 = vadd.f32 %v852_v7, %v1438_v56  ;;  %v868_v42 = vmul.f32 0.3125, %v864_v43  ;;  %v854_v17 = vmul.f32 0.125, %v1679_v46  ;;  %v1695_v4 = vpop.eup %1334 }
  0x6f   :  { %793 = vst [vmem:[#allocation2 + $0x48] sm:$0xf0] %v785_v14  ;;  %v875_v10 = vmul.f32 0.5, %v867_v13  ;;  %v857_v33 = vadd.f32 %v853_v47, %v1436_v55  ;;  %v865_v28 = vmul.f32 %v1670_v16, %v1670_v16  ;;  %v866_v58 = vmul.f32 %v1679_v46, %v1679_v46  ;;  %v1697_v55 = vpop.eup %1336 }
  0x70   :  { %v876_v22 = vmul.f32 0.5, %v868_v42  ;;  %v858_v48 = vadd.f32 %v854_v17, %v1438_v56  ;;  %v859_v20 = vadd.f32 %v851_v57, %v1448_v62  ;;  %v860_v59 = vadd.f32 %v852_v7, %v1450_v1  ;;  %v1701_v8 = vpop.eup %1338 }
  0x71   :  { %v883_v26 = vrot.slane %v875_v10, 2  ;;  %v869_v38 = vmul.f32 0.3125, %v865_v28  ;;  %v870_v40 = vmul.f32 0.3125, %v866_v58  ;;  %v871_v19 = vmul.f32 0.21875, %v863_v30  ;;  %v1703_v18 = vpop.eup %1340 }
  0x72   :  { %v884_v29 = vrot.slane %v876_v22, 2  ;;  %v872_v44 = vmul.f32 0.21875, %v864_v43  ;;  %v861_v11 = vadd.f32 %v853_v47, %v1448_v62  ;;  %v862_v25 = vadd.f32 %v854_v17, %v1450_v1 }
  0x73   :  { %v891_v56 = vsub.f32 %v855_v5, %v883_v26  ;;  %v877_v15 = vmul.f32 0.5, %v869_v38  ;;  %v878_v32 = vmul.f32 0.5, %v870_v40  ;;  %v895_v45 = vmul.f32 0.5, %v871_v19 }
  0x74   :  { %v892_v21 = vsub.f32 %v856_v41, %v884_v29  ;;  %v896_v50 = vmul.f32 0.5, %v872_v44  ;;  %v873_v34 = vmul.f32 0.21875, %v865_v28  ;;  %v874_v52 = vmul.f32 0.21875, %v866_v58 }
  0x75   :  { %v885_v27 = vrot.slane %v877_v15, 2  ;;  %v886_v31 = vrot.slane %v878_v32, 2  ;;  %v903_v23 = vrot.slane %v895_v45, 2  ;;  %v1005_v36 = vrot.slane %v867_v13, 2 }
  0x76   :  { %v919_v3 = vcombine.low %v891_v56, %v892_v21  ;;  %v904_v62 = vrot.slane %v896_v50, 2  ;;  %v897_v49 = vmul.f32 0.5, %v873_v34  ;;  %v898_v1 = vmul.f32 0.5, %v874_v52 }
  0x77   :  { %v893_v24 = vsub.f32 %v857_v33, %v885_v27  ;;  %v894_v54 = vsub.f32 %v858_v48, %v886_v31  ;;  %v911_v53 = vsub.f32 %v859_v20, %v903_v23  ;;  %v1006_v37 = vrot.slane %v868_v42, 2 }
  0x78   :  { %v926_v35 = vrot.slane %v919_v3, %v1446_v61  ;;  %v912_v9 = vsub.f32 %v860_v59, %v904_v62  ;;  %v905_v6 = vrot.slane %v897_v49, 2  ;;  %v906_v57 = vrot.slane %v898_v1, 2 }
  0x79   :  { %v934_v30 = vcombine.low %v893_v24, %v894_v54  ;;  %v1013_v0 = vadd.f32 %v1005_v36, %v891_v56  ;;  %v1014_v7 = vadd.f32 %v1006_v37, %v892_v21  ;;  %v1007_v43 = vrot.slane %v869_v38, 2 }
  0x7a   :  { %v933_v63 = vrot.slane %v926_v35, %v1446_v61  ;;  %v961_v5 = vcombine.low %v911_v53, %v912_v9  ;;  %v913_v13 = vsub.f32 %v861_v11, %v905_v6  ;;  %v914_v47 = vsub.f32 %v862_v25, %v906_v57 }
  0x7b   :  { %v941_v14 = vrot.slane %v934_v30, %v1446_v61  ;;  %v1021_v41 = vcombine.low %v1013_v0, %v1014_v7  ;;  %v1008_v17 = vrot.slane %v870_v40, 2  ;;  %v1015_v10 = vadd.f32 %v1007_v43, %v893_v24 }
  0x7c   :  { %952 = vst.msk [vmem:[#allocation2 + $0x20] ss:$8 sm:$0x3] %vm1501_vm0, %v933_v63  ;;  %v968_v42 = vrot.slane %v961_v5, %v1446_v61  ;;  %v977_v33 = vcombine.low %v913_v13, %v914_v47  ;;  %v1063_v28 = vrot.slane %v871_v19, 2  ;;  %v1064_v58 = vrot.slane %v872_v44, 2 }
  0x7d   :  { %v948_v22 = vrot.slane %v941_v14, %v1446_v61  ;;  %v1028_v48 = vrot.slane %v1021_v41, %v1446_v61  ;;  %v1016_v20 = vadd.f32 %v1008_v17, %v894_v54  ;;  %v1065_v59 = vrot.slane %v873_v34, 2 }
  0x7e   :  { %v969_v26 = vcombine.high %v968_v42, %v968_v42  ;;  %v984_v38 = vrot.slane %v977_v33, %v1446_v61  ;;  %v1071_v29 = vadd.f32 %v1063_v28, %v911_v53  ;;  %v1072_v40 = vadd.f32 %v1064_v58, %v912_v9 }
  0x7f   :  { %955 = vst.msk [vmem:[#allocation2 + $0x50] ss:$8 sm:$0x3] %vm1501_vm0, %v948_v22  ;;  %v1035_v11 = vrot.slane %v1028_v48, %v1446_v61  ;;  %v1036_v25 = vcombine.low %v1015_v10, %v1016_v20  ;;  %v1066_v56 = vrot.slane %v874_v52, 2  ;;  %v1073_v19 = vadd.f32 %v1065_v59, %v913_v13 }
  0x80   :  { %v976_v44 = vrot.slane %v969_v26, %v1446_v61  ;;  %v985_v15 = vcombine.high %v984_v38, %v984_v38  ;;  %v1079_v32 = vcombine.low %v1071_v29, %v1072_v40  ;;  %v1135_v45 = vmul.f32 %v1662_v12, %v1677_v2 }
  0x81   :  { %1054 = vst.msk [vmem:[#allocation2 + $0x22] ss:$8 sm:$0x3] %vm1501_vm0, %v1035_v11  ;;  %v1043_v21 = vrot.slane %v1036_v25, %v1446_v61  ;;  %v1074_v50 = vadd.f32 %v1066_v56, %v914_v47  ;;  %v1137_v34 = vmul.f32 %v1695_v4, %v1677_v2  ;;  %v1126_v52 = vrot.slane %v1664_v60, %v1431_v51 }
  0x82   :  { %996 = vst.msk [vmem:[#allocation2 + $0x21] ss:$8 sm:$0x3] %vm1501_vm0, %v976_v44  ;;  %v992_v27 = vrot.slane %v985_v15, %v1446_v61  ;;  %v1086_v31 = vrot.slane %v1079_v32, %v1446_v61  ;;  %v1151_v12 = vrot.slane %v1135_v45, 1  ;;  %v1130_v23 = vrot.slane %v1670_v16, %v1431_v51 }
  0x83   :  { %v1050_v36 = vrot.slane %v1043_v21, %v1446_v61  ;;  %v1095_v3 = vcombine.low %v1073_v19, %v1074_v50  ;;  %v1152_v62 = vrot.slane %v1137_v34, 1  ;;  %v1136_v2 = vmul.f32 %v1664_v60, %v1126_v52 }
  0x84   :  { %999 = vst.msk [vmem:[#allocation2 + $0x51] ss:$8 sm:$0x3] %vm1501_vm0, %v992_v27  ;;  %v1087_v4 = vcombine.high %v1086_v31, %v1086_v31  ;;  %v1138_v49 = vmul.f32 %v1697_v55, %v1126_v52  ;;  %v1139_v1 = vmul.f32 %v1670_v16, %v1130_v23  ;;  %v1141_v24 = vmul.f32 %v1701_v8, %v1130_v23 }
  0x85   :  { %1057 = vst.msk [vmem:[#allocation2 + $0x52] ss:$8 sm:$0x3] %vm1501_vm0, %v1050_v36  ;;  %v1102_v54 = vrot.slane %v1095_v3, %v1446_v61  ;;  %v1153_v53 = vsel %vm396_vm1, %v1151_v12, %v1152_v62  ;;  %v1154_v37 = vrot.slane %v1136_v2, 1  ;;  %v1134_v60 = vrot.slane %v1679_v46, %v1431_v51 }
  0x86   :  { %v1094_v35 = vrot.slane %v1087_v4, %v1446_v61  ;;  %1167 = vst [vmem:[#allocation2 + $0x20] sm:$0xf0] %v1153_v53  ;;  %v1155_v9 = vrot.slane %v1138_v49, 1  ;;  %v1157_v55 = vrot.slane %v1139_v1, 1  ;;  %v1158_v6 = vrot.slane %v1141_v24, 1 }
  0x87   :  { %v1103_v16 = vcombine.high %v1102_v54, %v1102_v54  ;;  %v1140_v8 = vmul.f32 %v1679_v46, %v1134_v60  ;;  %v1142_v57 = vmul.f32 %v1703_v18, %v1134_v60 }
  0x88   :  { %1114 = vst.msk [vmem:[#allocation2 + $0x23] ss:$8 sm:$0x3] %vm1501_vm0, %v1094_v35  ;;  %v1156_v30 = vsel %vm396_vm1, %v1154_v37, %v1155_v9  ;;  %v1159_v51 = vsel %vm396_vm1, %v1157_v55, %v1158_v6 }
  0x89   :  { %v1110_v0 = vrot.slane %v1103_v16, %v1446_v61  ;;  %1168 = vst [vmem:[#allocation2 + $0x28] sm:$0xf0] %v1156_v30  ;;  %1169 = vst [vmem:[#allocation2 + $0x50] sm:$0xf0] %v1159_v51  ;;  %v1160_v7 = vrot.slane %v1140_v8, 1  ;;  %v1161_v43 = vrot.slane %v1142_v57, 1 }
  0x8b   :  { %1117 = vst.msk [vmem:[#allocation2 + $0x53] ss:$8 sm:$0x3] %vm1501_vm0, %v1110_v0  ;;  %v1162_v46 = vsel %vm396_vm1, %v1160_v7, %v1161_v43 }
  0x8c   :  { %1170 = vst [vmem:[#allocation2 + $0x58] sm:$0xf0] %v1162_v46 }
  0x8d   :  { %1353 = shalt.err (!%p1350_p4)
}
  0x8e   :  { %s1354_s8 = scalar_lea.hbm %s1771_s2, 1536 }
  0x8f   :  { %p1355_p5 = scmp.ne.s32.totalorder %s1771_s2, %s1354_s8  ;;  %p1358_p6 = scmp.lt.u32.totalorder %s1354_s8, %s1771_s2 }
  0x91   :  { %p1360_p7 = pnand %p1358_p6, %p1355_p5 }
  0x93   :  { %1363 = shalt.err (!%p1360_p7)
}
  0x94   :  { %s1368_s13 = smov 256   ;;  %s1369_s0 = smov 16  }
  0x95   :  { %1182 = dma.vmem_to_hbm [thread:$0]  %s1177_s4, 1536, %s1771_s2, [#allocation3], %s1368_s13, %s1368_s13, %s1369_s0  }
  0x96   :  { %1364 = dma.done.wait [#allocation3], 1536  }
  0x97   :  { %1365 = vsyncadd [#allocation3], 4294965760 }
  0x98   :  { %1186 = vsyncpa [#allocation3], 1 }

</bundles_post_ra>
